<compile_context>
chip_gen: v7x
topology: tpu7x:2x2x1
jax: 0.10.0
libtpu: 0.0.40
codegen_flags: <defaults>
</compile_context>

<pallas_src>
import jax
import jax.numpy as jnp
from jax import lax
from jax.experimental import pallas as pl
from jax.experimental.pallas import tpu as pltpu

EPS = 1e-12  # torch.nn.functional.normalize default eps


def _round_up(n, m):
    return ((n + m - 1) // m) * m


def _choose_tile(n, align, pref_align, cap):
    """Tile size for a dim of extent n: MXU-preferred alignment when large,
    minimal hardware alignment when small, capped at `cap`."""
    if n >= cap:
        return cap
    if n >= pref_align:
        return min(_round_up(n, pref_align), cap)
    return _round_up(n, align)


def normed_linear_kernel(x_ref, w_ref, css_ref, o_ref, rss_ref):
    j = pl.program_id(1)
    k = pl.program_id(2)

    @pl.when(k == 0)
    def _():
        o_ref[...] = jnp.zeros_like(o_ref)

    x = x_ref[...]                      # (tm, tk) — fed to the MXU as-is
    w = w_ref[...]                      # (tk, tn)

    # Raw matmul accumulation directly in the resident f32 output tile.
    o_ref[...] += jnp.dot(x, w, preferred_element_type=jnp.float32)

    # Row sum-of-squares depends only on (i, k): compute it once per i (at
    # j == 0, piggy-backed on the x tile the matmul already loaded) and reuse
    # it for all j > 0 of the same i.  The j axis is "arbitrary", so every
    # core that runs some j of an i also ran that i's j == 0 first.
    @pl.when(jnp.logical_and(j == 0, k == 0))
    def _():
        rss_ref[...] = jnp.zeros_like(rss_ref)

    @pl.when(j == 0)
    def _():
        xf = x.astype(jnp.float32)
        rss_ref[...] += jnp.sum(xf * xf, axis=1, keepdims=True)   # (tm, 1)

    @pl.when(k == pl.num_programs(2) - 1)
    def _():
        # 1/max(||.||, eps) == rsqrt(max(sumsq, eps^2)); rsqrt runs on the EUP.
        r = lax.rsqrt(jnp.maximum(rss_ref[...], EPS * EPS))    # (tm, 1)
        c = lax.rsqrt(jnp.maximum(css_ref[...], EPS * EPS))    # (1, tn)
        o_ref[...] = o_ref[...] * r * c


def normed_linear(x, weight):
    """out = F.normalize(x, dim=1) @ F.normalize(weight, dim=0)."""
    N, D = x.shape
    D2, M = weight.shape
    assert D == D2

    # Tiles: sublane-aligned rows, lane-dense columns, 256-preferred for the
    # 2x256 MXUs; caps sized against v7x's 32 MiB scoped-VMEM default.
    tm = _choose_tile(N, 8, 256, 512)
    tn = _choose_tile(M, 128, 256, 512)
    tk = min(_round_up(D, 128), 1024)
    Np, Dp, Mp = _round_up(N, tm), _round_up(D, tk), _round_up(M, tn)

    # Zero-padding keeps results exact: zero K-padding adds 0 to both the dots
    # and the sum-of-squares; padded rows/cols are sliced off (their
    # accumulator entries are exactly 0, so the 1/eps scale is harmless).
    if (Np, Dp) != (N, D):
        # For typical OneLayerNN shapes the tiles match N/D exactly, so this
        # extra HBM pass over x is skipped.
        x = jnp.pad(x, ((0, Np - N), (0, Dp - D)))
    if (Dp, Mp) != (D, M):
        weight = jnp.pad(weight, ((0, Dp - D), (0, Mp - M)))

    # Per-column sum-of-squares of W, hoisted out of the kernel's K loop.
    wf = weight.astype(jnp.float32)
    css = jnp.sum(wf * wf, axis=0, keepdims=True)               # (1, Mp)

    n_i, n_j, n_k = Np // tm, Mp // tn, Dp // tk
    grid = (n_i, n_j, n_k)

    out = pl.pallas_call(
        normed_linear_kernel,
        out_shape=jax.ShapeDtypeStruct((Np, Mp), jnp.float32),
        grid_spec=pl.GridSpec(
            grid=grid,
            in_specs=[
                pl.BlockSpec((tm, tk), lambda i, j, k: (i, k)),
                pl.BlockSpec((tk, tn), lambda i, j, k: (k, j)),
                pl.BlockSpec((1, tn), lambda i, j, k: (0, j)),
            ],
            out_specs=pl.BlockSpec((tm, tn), lambda i, j, k: (i, j)),
            scratch_shapes=[
                pltpu.VMEM((tm, 1), jnp.float32),   # row sum-of-squares
            ],
        ),
        compiler_params=pltpu.CompilerParams(
            # i parallel (megacore-shardable); j must stay sequential per core
            # so the j==0 rss computation is always visible to j>0.
            dimension_semantics=("parallel", "arbitrary", "arbitrary"),
            vmem_limit_bytes=32 * 1024 * 1024,
        ),
        cost_estimate=pl.CostEstimate(
            flops=2 * Np * Dp * Mp,
            transcendentals=Np * n_j + Mp * n_i,
            bytes_accessed=4 * (Np * Dp * n_j      # x re-read per j tile
                                + Dp * Mp * n_i    # w re-read per i tile
                                + Mp * n_i         # css re-read per i tile
                                + Np * Mp),        # output written once
        ),
    )(x, weight, css)

    return out[:N, :M]


def one_layer_nn_forward(x, weight):
    """OneLayerNN.forward: flatten to (-1, d0), then NormedLinear."""
    d0 = weight.shape[0]
    return normed_linear(x.reshape(-1, d0), weight)


def init_weight(key, in_features, out_features, maxnorm=1e-5, scale=1e5):
    # Mimics torch.Tensor(in,out).uniform_(-1,1).renorm_(2, 1, 1e-5).mul_(1e5):
    # clamp each column's L2 norm to maxnorm, then scale by 1e5.
    w = jax.random.uniform(key, (in_features, out_features),
                           minval=-1.0, maxval=1.0, dtype=jnp.float32)
    col_norm = jnp.linalg.norm(w, axis=0, keepdims=True)
    factor = jnp.where(col_norm > maxnorm, maxnorm / (col_norm + 1e-7), 1.0)
    return w * factor * scale


def reference(x, weight):
    d0 = weight.shape[0]
    x2 = x.reshape(-1, d0)
    x_n = x2 / jnp.maximum(jnp.linalg.norm(x2, axis=1, keepdims=True), EPS)
    w_n = weight / jnp.maximum(jnp.linalg.norm(weight, axis=0, keepdims=True), EPS)
    return x_n @ w_n


if __name__ == "__main__":
    key = jax.random.PRNGKey(0)
    kx, kw = jax.random.split(key)

    # OneLayerNN(input_shape=(4, 8, 8), n_classes=10), batch of 8 images.
    batch, input_shape, n_classes = 8, (4, 8, 8), 10
    d0 = 4 * 8 * 8  # 256

    x = jax.random.normal(kx, (batch,) + input_shape, dtype=jnp.float32)
    weight = init_weight(kw, d0, n_classes)

    out = one_layer_nn_forward(x, weight)
    jax.block_until_ready(out)

    ref = reference(x, weight)
    assert out.shape == (batch, n_classes)
    assert jnp.allclose(out, ref, atol=1e-5, rtol=1e-5), "mismatch vs reference"

    print("KERNEL_OK")
</pallas_src>

<mosaic_0001>
module attributes {stable_mosaic.version = 11 : i64} {
  func.func @normed_linear_kernel(%arg0: i32, %arg1: i32, %arg2: i32, %arg3: memref<8x256xf32, #tpu.memory_space<vmem>>, %arg4: memref<256x128xf32, #tpu.memory_space<vmem>>, %arg5: memref<1x128xf32, #tpu.memory_space<vmem>>, %arg6: memref<8x128xf32, #tpu.memory_space<vmem>>, %arg7: memref<8x1xf32, #tpu.memory_space<vmem>>) attributes {dimension_semantics = [#tpu.dimension_semantics<parallel>, #tpu.dimension_semantics<arbitrary>, #tpu.dimension_semantics<arbitrary>], iteration_bounds = array<i64: 1, 1, 1>, scalar_prefetch = 0 : i64, scratch_operands = 1 : i64, tpu.core_type = #tpu.core_type<tc>, window_params = [{transform_indices = @transform_0, window_bounds = array<i64: 8, 256>}, {transform_indices = @transform_1, window_bounds = array<i64: 256, 128>}, {transform_indices = @transform_2, window_bounds = array<i64: 1, 128>}, {transform_indices = @transform_3, window_bounds = array<i64: 8, 128>}]} {
    %c0_i32 = arith.constant 0 : i32
    %0 = arith.cmpi eq, %arg2, %c0_i32 : i32
    %1 = arith.extui %0 : i1 to i32
    %c0_i32_0 = arith.constant 0 : i32
    %2 = arith.cmpi ne, %1, %c0_i32_0 : i32
    scf.if %2 {
      %cst_15 = arith.constant 0.000000e+00 : f32
      %20 = vector.broadcast %cst_15 : f32 to vector<8x128xf32>
      %c0_16 = arith.constant 0 : index
      %c0_17 = arith.constant 0 : index
      %21 = vector.load %arg6[%c0_16, %c0_17] : memref<8x128xf32, #tpu.memory_space<vmem>>, vector<8x128xf32>
      tpu.vector_store %arg6[%c0_16, %c0_17], %20 {strides = array<i32>} : memref<8x128xf32, #tpu.memory_space<vmem>>, vector<8x128xf32>,
    } else {
    }
    %c0 = arith.constant 0 : index
    %c0_1 = arith.constant 0 : index
    %3 = vector.load %arg3[%c0, %c0_1] : memref<8x256xf32, #tpu.memory_space<vmem>>, vector<8x256xf32>
    %c0_2 = arith.constant 0 : index
    %c0_3 = arith.constant 0 : index
    %4 = vector.load %arg4[%c0_2, %c0_3] : memref<256x128xf32, #tpu.memory_space<vmem>>, vector<256x128xf32>
    %c0_4 = arith.constant 0 : index
    %c0_5 = arith.constant 0 : index
    %5 = vector.load %arg6[%c0_4, %c0_5] : memref<8x128xf32, #tpu.memory_space<vmem>>, vector<8x128xf32>
    %cst = arith.constant dense<0.000000e+00> : vector<8x128xf32>
    %6 = tpu.matmul %3, %4, %cst {dimension_numbers = #tpu.dot_dimension_numbers<[1], [0], [0], [1], [0, 0, 1, 1], [], []>} : vector<8x256xf32>, vector<256x128xf32>, vector<8x128xf32> -> vector<8x128xf32>
    %7 = arith.addf %5, %6 : vector<8x128xf32>
    %c0_6 = arith.constant 0 : index
    %c0_7 = arith.constant 0 : index
    %8 = vector.load %arg6[%c0_6, %c0_7] : memref<8x128xf32, #tpu.memory_space<vmem>>, vector<8x128xf32>
    tpu.vector_store %arg6[%c0_6, %c0_7], %7 {strides = array<i32>} : memref<8x128xf32, #tpu.memory_space<vmem>>, vector<8x128xf32>,
    %c0_i32_8 = arith.constant 0 : i32
    %9 = arith.cmpi eq, %arg1, %c0_i32_8 : i32
    %c0_i32_9 = arith.constant 0 : i32
    %10 = arith.cmpi eq, %arg2, %c0_i32_9 : i32
    %11 = arith.andi %9, %10 : i1
    %12 = arith.extui %11 : i1 to i32
    %c0_i32_10 = arith.constant 0 : i32
    %13 = arith.cmpi ne, %12, %c0_i32_10 : i32
    scf.if %13 {
      %cst_15 = arith.constant 0.000000e+00 : f32
      %20 = vector.broadcast %cst_15 : f32 to vector<8x1xf32>
      %c0_16 = arith.constant 0 : index
      %c0_17 = arith.constant 0 : index
      %21 = vector.load %arg7[%c0_16, %c0_17] : memref<8x1xf32, #tpu.memory_space<vmem>>, vector<8x1xf32>
      tpu.vector_store %arg7[%c0_16, %c0_17], %20 {strides = array<i32>} : memref<8x1xf32, #tpu.memory_space<vmem>>, vector<8x1xf32>,
    } else {
    }
    %c0_i32_11 = arith.constant 0 : i32
    %14 = arith.cmpi eq, %arg1, %c0_i32_11 : i32
    %15 = arith.extui %14 : i1 to i32
    %c0_i32_12 = arith.constant 0 : i32
    %16 = arith.cmpi ne, %15, %c0_i32_12 : i32
    scf.if %16 {
      %c0_15 = arith.constant 0 : index
      %c0_16 = arith.constant 0 : index
      %20 = vector.load %arg7[%c0_15, %c0_16] : memref<8x1xf32, #tpu.memory_space<vmem>>, vector<8x1xf32>
      %21 = arith.mulf %3, %3 : vector<8x256xf32>
      %cst_17 = arith.constant dense<0.000000e+00> : vector<8xf32>
      %22 = vector.multi_reduction <add>, %21, %cst_17 [1] : vector<8x256xf32> to vector<8xf32>
      %23 = vector.shape_cast %22 : vector<8xf32> to vector<8x1xf32>
      %24 = arith.addf %20, %23 : vector<8x1xf32>
      %c0_18 = arith.constant 0 : index
      %c0_19 = arith.constant 0 : index
      %25 = vector.load %arg7[%c0_18, %c0_19] : memref<8x1xf32, #tpu.memory_space<vmem>>, vector<8x1xf32>
      tpu.vector_store %arg7[%c0_18, %c0_19], %24 {strides = array<i32>} : memref<8x1xf32, #tpu.memory_space<vmem>>, vector<8x1xf32>,
    } else {
    }
    %c0_i32_13 = arith.constant 0 : i32
    %17 = arith.cmpi eq, %arg2, %c0_i32_13 : i32
    %18 = arith.extui %17 : i1 to i32
    %c0_i32_14 = arith.constant 0 : i32
    %19 = arith.cmpi ne, %18, %c0_i32_14 : i32
    scf.if %19 {
      %c0_15 = arith.constant 0 : index
      %c0_16 = arith.constant 0 : index
      %20 = vector.load %arg7[%c0_15, %c0_16] : memref<8x1xf32, #tpu.memory_space<vmem>>, vector<8x1xf32>
      %cst_17 = arith.constant 1.000000e-24 : f32
      %21 = vector.broadcast %cst_17 : f32 to vector<8x1xf32>
      %22 = arith.maximumf %20, %21 : vector<8x1xf32>
      %23 = math.rsqrt %22 : vector<8x1xf32>
      %c0_18 = arith.constant 0 : index
      %c0_19 = arith.constant 0 : index
      %24 = vector.load %arg5[%c0_18, %c0_19] : memref<1x128xf32, #tpu.memory_space<vmem>>, vector<1x128xf32>
      %cst_20 = arith.constant 1.000000e-24 : f32
      %25 = vector.broadcast %cst_20 : f32 to vector<1x128xf32>
      %26 = arith.maximumf %24, %25 : vector<1x128xf32>
      %27 = math.rsqrt %26 : vector<1x128xf32>
      %c0_21 = arith.constant 0 : index
      %c0_22 = arith.constant 0 : index
      %28 = vector.load %arg6[%c0_21, %c0_22] : memref<8x128xf32, #tpu.memory_space<vmem>>, vector<8x128xf32>
      %29 = vector.broadcast %23 : vector<8x1xf32> to vector<8x128xf32>
      %30 = arith.mulf %28, %29 : vector<8x128xf32>
      %31 = vector.broadcast %27 : vector<1x128xf32> to vector<8x128xf32>
      %32 = arith.mulf %30, %31 : vector<8x128xf32>
      %c0_23 = arith.constant 0 : index
      %c0_24 = arith.constant 0 : index
      %33 = vector.load %arg6[%c0_23, %c0_24] : memref<8x128xf32, #tpu.memory_space<vmem>>, vector<8x128xf32>
      tpu.vector_store %arg6[%c0_23, %c0_24], %32 {strides = array<i32>} : memref<8x128xf32, #tpu.memory_space<vmem>>, vector<8x128xf32>,
    } else {
    }
    return
  }
  func.func @transform_0(%arg0: i32, %arg1: i32, %arg2: i32) -> (i32, i32) {
    %c0_i32 = arith.constant 0 : i32
    return %arg0, %arg2 : i32, i32
  }
  func.func @transform_1(%arg0: i32, %arg1: i32, %arg2: i32) -> (i32, i32) {
    %c0_i32 = arith.constant 0 : i32
    return %arg2, %arg1 : i32, i32
  }
  func.func @transform_2(%arg0: i32, %arg1: i32, %arg2: i32) -> (i32, i32) {
    %c0_i32 = arith.constant 0 : i32
    %c0_i32_0 = arith.constant 0 : i32
    return %c0_i32, %arg1 : i32, i32
  }
  func.func @transform_3(%arg0: i32, %arg1: i32, %arg2: i32) -> (i32, i32) {
    %c0_i32 = arith.constant 0 : i32
    return %arg0, %arg1 : i32, i32
  }
}

</mosaic_0001>

<bundles_post_ra>
// kernel: tpu_custom_call.1
= control target key start
LH: loop header
LB: loop body
LE: loop exit
PB: predicated region body
PF: predicated region fallthrough
CT: control target
= control target key end

     0   :  { %8 = vsyncpa [#allocation4], 0  ;;  %s443_s0 = inlined_call_operand.hbm [shape: f32[8,256], index: 0, kind: input, shape index: {}]   ;;  %s444_s1 = inlined_call_operand.hbm [shape: f32[256,128], index: 1, kind: input, shape index: {}]   ;;  %s445_s2 = inlined_call_operand.vmem [shape: f32[1,128], index: 2, kind: input, shape index: {}]   ;;  %s446_s3 = inlined_call_operand.hbm [shape: f32[8,128], index: 3, kind: output, shape index: {}]  }
   0x1   :  { %9 = vsyncpa [#allocation7], 0 }
   0x2   :  { %10 = vsyncpa [#allocation5], 0  ;;  %s363_s12 = smov [#allocation3]   ;;  %s364_s14 = smov [#allocation6]  }
   0x3   :  { %s17_s13 = sshll.u32 %s363_s12, 4  ;;  %s26_s15 = sshll.u32 %s364_s14, 4  ;;  %s18_s13 = int_to_ptr.vmem [resolvable:$true] %s17_s13  ;;  %s390_s15 = int_to_ptr.vmem [resolvable:$true] %s26_s15 }
   0x4   :  { %s291_s18 = scalar_lea.hbm %s443_s0, 256 }
   0x5   :  { %p292_p0 = scmp.ne.s32.totalorder %s443_s0, %s291_s18  ;;  %p295_p1 = scmp.lt.u32.totalorder %s291_s18, %s443_s0 }
   0x7   :  { %p297_p2 = pnand %p295_p1, %p292_p0 }
   0x9   :  { %300 = shalt.err (!%p297_p2)
}
   0xa   :  { %s301_s23 = scalar_lea.vmem %s18_s13, 256  ;;  %p306_p4 = scmp.lt.s32.totalorder %s18_s13, %s18_s13 }
   0xb   :  { %p302_p3 = scmp.ne.s32.totalorder %s18_s13, %s301_s23  ;;  %p307_p5 = scmp.lt.s32.totalorder %s301_s23, %s301_s23 }
   0xd   :  { %p308_p6 = por %p307_p5, %p306_p4 }
   0xf   :  { %p309_p7 = pnand %p308_p6, %p302_p3 }
  0x11   :  { %312 = shalt.err (!%p309_p7)
}
  0x12   :  { %20 = dma.hbm_to_vmem [thread:$0]  %s443_s0, 256, %s18_s13, [#allocation4]  }
  0x13   :  { %s313_s28 = scalar_lea.hbm %s444_s1, 4096 }
  0x14   :  { %p314_p8 = scmp.ne.s32.totalorder %s444_s1, %s313_s28  ;;  %p317_p9 = scmp.lt.u32.totalorder %s313_s28, %s444_s1 }
  0x16   :  { %p319_p10 = pnand %p317_p9, %p314_p8 }
  0x18   :  { %322 = shalt.err (!%p319_p10)
}
  0x19   :  { %s323_s6 = scalar_lea.vmem %s390_s15, 4096  ;;  %p328_p12 = scmp.lt.s32.totalorder %s390_s15, %s390_s15 }
  0x1a   :  { %p324_p11 = scmp.ne.s32.totalorder %s390_s15, %s323_s6  ;;  %p329_p13 = scmp.lt.s32.totalorder %s323_s6, %s323_s6 }
  0x1c   :  { %p330_p0 = por %p329_p13, %p328_p12 }
  0x1e   :  { %p331_p1 = pnand %p330_p0, %p324_p11 }
  0x20   :  { %334 = shalt.err (!%p331_p1)
}
  0x21   :  { %s365_s0 = smov 128   ;;  %s366_s7 = smov 8  }
  0x22   :  { %32 = dma.hbm_to_vmem [thread:$0]  %s444_s1, 4096, %s390_s15, [#allocation7], %s365_s0, %s365_s0, %s366_s7  }
  0x23   :  { %357 = dma.done.wait [#allocation4], 256  }
  0x24   :  { %358 = vsyncadd [#allocation4], 4294967040 }
  0x25   :  { %359 = dma.done.wait [#allocation7], 4096  }
  0x26   :  { %360 = vsyncadd [#allocation7], 4294963200  ;;  %vm158_vm0 = vcmask 7168   ;;  %v367_v0 = vmov 0.0   ;;  %v422_v1 = vld [vmem:[#allocation3] sm:$0xff]  ;;  %v47_v2 = vld [vmem:[#allocation3 + $0x8] sm:$0xff] }
  0x27   :  { %159 = vst.msk [vmem:[#allocation2] sm:$0xff] %vm158_vm0, %v367_v0  ;;  %v64_v3 = vld [vmem:[#allocation6 + $0x80] sm:$0xff]  ;;  %v164_v4 = vmul.f32 %v422_v1, %v422_v1  ;;  %v165_v5 = vmul.f32 %v47_v2, %v47_v2  ;;  %v65_v6 = vld [vmem:[#allocation6 + $0x88] sm:$0xff]  ;;  %145 = vmatprep.mubr.f32.mxu0 %v47_v2  ;;  %v66_v11 = vld [vmem:[#allocation6 + $0x90] sm:$0xff]  ;;  %v368_v47 = vmov 0   ;;  %s369_s11 = smov [#allocation8]  }
  0x28   :  { %v48_v7 = vld [vmem:[#allocation6] sm:$0xff]  ;;  %v49_v8 = vld [vmem:[#allocation6 + $0x8] sm:$0xff]  ;;  %v247_v9 = vpack.c.bf16 %v65_v6, %v64_v3  ;;  %v67_v12 = vld [vmem:[#allocation6 + $0x98] sm:$0xff]  ;;  %286 = vset.pattern.permute.xlu0 %v368_v47  ;;  %s202_s12 = sshll.u32 %s369_s11, 4  ;;  %s203_s12 = int_to_ptr.vmem [resolvable:$true] %s202_s12 }
  0x29   :  { %v249_v10 = vpack.c.bf16 %v49_v8, %v48_v7  ;;  %v50_v13 = vld [vmem:[#allocation6 + $0x10] sm:$0xff]  ;;  %v166_v14 = vadd.f32 %v165_v5, %v164_v4  ;;  %v251_v15 = vpack.c.bf16 %v67_v12, %v66_v11  ;;  %v51_v16 = vld [vmem:[#allocation6 + $0x18] sm:$0xff]  ;;  %v68_v17 = vld [vmem:[#allocation6 + $0xa0] sm:$0xff]  ;;  %s335_s13 = scalar_lea.vmem %s203_s12, 128  ;;  %p340_p3 = scmp.lt.s32.totalorder %s203_s12, %s203_s12 }
  0x2a   :  { %v69_v18 = vld [vmem:[#allocation6 + $0xa8] sm:$0xff]  ;;  %248 = vmatprep.subr.bf16.mxu0 %v247_v9  ;;  %v253_v19 = vpack.c.bf16 %v51_v16, %v50_v13  ;;  %v52_v21 = vld [vmem:[#allocation6 + $0x20] sm:$0xff]  ;;  %v70_v23 = vld [vmem:[#allocation6 + $0xb0] sm:$0xff]  ;;  %p336_p2 = scmp.ne.s32.totalorder %s203_s12, %s335_s13  ;;  %p341_p4 = scmp.lt.s32.totalorder %s335_s13, %s335_s13 }
  0x2b   :  { %167 = vadd.xlane.f32.xlu0 %v166_v14  ;;  %250 = vmatpush3.bf16.msra.mxu0 %v249_v10  ;;  %v255_v20 = vpack.c.bf16 %v69_v18, %v68_v17  ;;  %v53_v22 = vld [vmem:[#allocation6 + $0x28] sm:$0xff]  ;;  %v71_v24 = vld [vmem:[#allocation6 + $0xb8] sm:$0xff]  ;;  %v54_v27 = vld [vmem:[#allocation6 + $0x30] sm:$0xff] }
  0x2c   :  { %252 = vmatprep.subr.bf16.mxu0 %v251_v15  ;;  %v257_v25 = vpack.c.bf16 %v53_v22, %v52_v21  ;;  %v259_v26 = vpack.c.bf16 %v71_v24, %v70_v23  ;;  %v55_v28 = vld [vmem:[#allocation6 + $0x38] sm:$0xff]  ;;  %v72_v29 = vld [vmem:[#allocation6 + $0xc0] sm:$0xff]  ;;  %v73_v30 = vld [vmem:[#allocation6 + $0xc8] sm:$0xff]  ;;  %p342_p5 = por %p341_p4, %p340_p3 }
  0x2d   :  { %v261_v31 = vpack.c.bf16 %v55_v28, %v54_v27  ;;  %v263_v32 = vpack.c.bf16 %v73_v30, %v72_v29  ;;  %v56_v33 = vld [vmem:[#allocation6 + $0x40] sm:$0xff]  ;;  %v57_v34 = vld [vmem:[#allocation6 + $0x48] sm:$0xff]  ;;  %v74_v35 = vld [vmem:[#allocation6 + $0xd0] sm:$0xff] }
  0x2e   :  { %v75_v36 = vld [vmem:[#allocation6 + $0xd8] sm:$0xff]  ;;  %v265_v37 = vpack.c.bf16 %v57_v34, %v56_v33  ;;  %v58_v39 = vld [vmem:[#allocation6 + $0x50] sm:$0xff]  ;;  %v76_v41 = vld [vmem:[#allocation6 + $0xe0] sm:$0xff]  ;;  %p343_p6 = pnand %p342_p5, %p336_p2 }
  0x2f   :  { %254 = vmatpush3.bf16.msra.mxu0 %v253_v19  ;;  %v267_v38 = vpack.c.bf16 %v75_v36, %v74_v35  ;;  %v59_v40 = vld [vmem:[#allocation6 + $0x58] sm:$0xff]  ;;  %v77_v42 = vld [vmem:[#allocation6 + $0xe8] sm:$0xff]  ;;  %v60_v45 = vld [vmem:[#allocation6 + $0x60] sm:$0xff] }
  0x30   :  { %256 = vmatprep.subr.bf16.mxu0 %v255_v20  ;;  %v269_v43 = vpack.c.bf16 %v59_v40, %v58_v39  ;;  %v271_v44 = vpack.c.bf16 %v77_v42, %v76_v41  ;;  %v61_v46 = vld [vmem:[#allocation6 + $0x68] sm:$0xff]  ;;  %v78_v48 = vld [vmem:[#allocation6 + $0xf0] sm:$0xff]  ;;  %v79_v49 = vld [vmem:[#allocation6 + $0xf8] sm:$0xff] }
  0x31   :  { %v273_v50 = vpack.c.bf16 %v61_v46, %v60_v45  ;;  %v275_v51 = vpack.c.bf16 %v79_v49, %v78_v48  ;;  %v62_v52 = vld [vmem:[#allocation6 + $0x70] sm:$0xff]  ;;  %v63_v53 = vld [vmem:[#allocation6 + $0x78] sm:$0xff]  ;;  %v163_v55 = vld [vmem:[#allocation2] sm:$0xff] }
  0x32   :  { %v277_v54 = vpack.c.bf16 %v63_v53, %v62_v52  ;;  %v178_v0 = vld [vmem:[%s445_s2] sm:$0x1] }
  0x33   :  { %258 = vmatpush3.bf16.msra.mxu0 %v257_v25  ;;  %v179_v2 = vmax.f32 %v178_v0, 1e-24 }
  0x34   :  { %260 = vmatprep.subr.bf16.mxu0 %v259_v26 }
  0x37   :  { %262 = vmatpush3.bf16.msra.mxu0 %v261_v31 }
  0x38   :  { %264 = vmatprep.subr.bf16.mxu0 %v263_v32 }
  0x3b   :  { %266 = vmatpush3.bf16.msra.mxu0 %v265_v37 }
  0x3c   :  { %268 = vmatprep.subr.bf16.mxu0 %v267_v38 }
  0x3f   :  { %270 = vmatpush3.bf16.msra.mxu0 %v269_v43 }
  0x40   :  { %272 = vmatprep.subr.bf16.mxu0 %v271_v44 }
  0x43   :  { %274 = vmatpush3.bf16.msra.mxu0 %v273_v50 }
  0x44   :  { %276 = vmatprep.subr.bf16.mxu0 %v275_v51 }
  0x47   :  { %278 = vmatpush3.bf16.msra.mxu0 %v277_v54 }
  0x4a   :  { %146 = vmatmul.mubr.f32.vlgmr.msra.gmra.mrb[0].mxu0 %v422_v1  ;;  %v189_v1 = vlaneseq }
  0x4c   :  { %v190_v3 = vshrl.u32 %v189_v1, 7 }
  0x4e   :  { %v191_v4 = vsub.s32 0, %v190_v3 }
  0xb8   :  { %v168_v56 = vpop.xlane.xlu0 %167 }
  0xb9   :  { %v169_v57 = vadd.f32 %v168_v56, %v163_v55 }
  0xbb   :  { %171 = vst.msk [vmem:[#allocation2] sm:$0xff] %vm158_vm0, %v169_v57 }
  0xc2   :  { %v175_v58 = vld [vmem:[#allocation2] sm:$0xff] }
  0xc3   :  { %v176_v59 = vmax.f32 %v175_v58, 1e-24 }
  0xc5   :  { %287 = vrsqrt.f32 %v176_v59 }
  0xc6   :  { %289 = vrsqrt.f32 %v179_v2 }
  0xcf   :  { %v288_v60 = vpop.eup %287 }
  0xd0   :  { %184 = vperm.xlu0 %286, %v288_v60   ;;  %v290_v5 = vpop.eup %289 }
  0xd1   :  { %v192_v6 = vrot.slane %v290_v5, %v191_v4 }
 0x11d   :  { %v244_v61 = vpop.f32.mrb[0].mxu0 }
 0x11e   :  { %v245_v62 = vpop.f32.mrb[1].mxu0 }
 0x11f   :  { %v246_v63 = vadd.f32 %v245_v62, %v244_v61 }
 0x14f   :  { %v185_v7 = vpop.permute.xlu0 %184 }
 0x150   :  { %v187_v8 = vmul.f32 %v246_v63, %v185_v7 }
 0x152   :  { %v194_v9 = vmul.f32 %v192_v6, %v187_v8 }
 0x154   :  { %195 = vst [vmem:[#allocation8] sm:$0xff] %v194_v9 }
 0x155   :  { %346 = shalt.err (!%p343_p6)
}
 0x156   :  { %s347_s15 = scalar_lea.hbm %s446_s3, 128 }
 0x157   :  { %p348_p7 = scmp.ne.s32.totalorder %s446_s3, %s347_s15  ;;  %p351_p8 = scmp.lt.u32.totalorder %s347_s15, %s446_s3 }
 0x159   :  { %p353_p9 = pnand %p351_p8, %p348_p7 }
 0x15b   :  { %356 = shalt.err (!%p353_p9)
}
 0x15c   :  { %205 = dma.vmem_to_hbm [thread:$0]  %s203_s12, 128, %s446_s3, [#allocation5]  }
 0x15d   :  { %361 = dma.done.wait [#allocation5], 128  }
 0x15e   :  { %362 = vsyncadd [#allocation5], 4294967168 }
 0x15f   :  { %209 = vsyncpa [#allocation4], 1 }
 0x160   :  { %210 = vsyncpa [#allocation7], 1 }
 0x161   :  { %211 = vsyncpa [#allocation5], 1 }

</bundles_post_ra>
